<compile_context>
chip_gen: v5e
topology: v5e:2x2
jax: 0.10.0
libtpu: 0.0.40
codegen_flags: <defaults>
</compile_context>

<pallas_src>
import jax
import jax.numpy as jnp
from jax.experimental import pallas as pl
from jax.experimental.pallas import tpu as pltpu


def _locally_connected_kernel(x_ref, w_ref, b_ref, o_ref):
    """One grid step: (TN, TD*m1) @ block-diag (TD*m1, TD*m2) + bias row.

    x_ref: (TN, TD*m1)  w_ref: (1, TD*m1, TD*m2)  b_ref: (1, 1, TD*m2)
    o_ref: (TN, TD*m2)
    """
    acc = jnp.dot(x_ref[...], w_ref[0], preferred_element_type=jnp.float32)
    acc = acc + b_ref[0].astype(jnp.float32)          # (1, TD*m2) broadcast, once
    o_ref[...] = acc.astype(o_ref.dtype)


def _round_up(v: int, m: int) -> int:
    return (v + m - 1) // m * m


def _pick_tile(dim: int, cap: int, multiple: int) -> int:
    """Largest divisor of `dim` that is a multiple of `multiple` and <= cap.

    Falls back to `dim` itself (full extent), which always satisfies the
    Pallas (8, 128) block constraint because full-extent block dims are allowed.
    """
    best = None
    cap = min(cap, dim)
    t = multiple
    while t <= cap:
        if dim % t == 0:
            best = t
        t += multiple
    return best if best is not None else dim


def _pick_td(d: int, m1: int, m2: int, itemsize: int) -> int:
    """Pick TD (local layers fused per grid step).

    Valid TD must divide d and give lane-dense block last dims, i.e.
    TD*m1 % 128 == 0 and TD*m2 % 128 == 0, OR be the full extent TD == d.
    Among valid candidates prefer lane-dense ones with TD*m1 near 256 and
    TD*m2 near 128 (MXU-sized), with a modest cap on the block-diagonal
    weight tile so the TDx weight inflation stays cheap.
    """
    best, best_score = None, None
    for td in range(1, d + 1):
        if d % td:
            continue
        k, n2 = td * m1, td * m2
        lane_ok = (k % 128 == 0) and (n2 % 128 == 0)
        if not (lane_ok or td == d):
            continue
        wblk_bytes = k * _round_up(n2, 128) * itemsize
        if wblk_bytes > 8 * 1024 * 1024 and td != d:
            continue
        score = (0 if lane_ok else 1,              # lane-dense first
                 abs(k - 256) + abs(n2 - 128),     # MXU-sized K/N
                 wblk_bytes)                       # minimal weight inflation
        if best_score is None or score < best_score:
            best, best_score = td, score
    return best if best is not None else d


def locally_connected(x, weight, bias=None, compute_dtype=None):
    """x: [n, d, m1], weight: [d, m1, m2], bias: [d, m2] or None -> [n, d, m2].

    compute_dtype: optional dtype (e.g. jnp.bfloat16) for the streamed
    x/weight/bias; MXU accumulation stays f32, output keeps x.dtype.
    """
    n, d, m1 = x.shape
    dw, m1w, m2 = weight.shape
    assert (dw, m1w) == (d, m1), "weight must have shape [d, m1, m2]"
    out_dtype = x.dtype
    if bias is None:
        bias = jnp.zeros((d, m2), dtype=weight.dtype)

    stream_dtype = jnp.dtype(compute_dtype) if compute_dtype is not None else jnp.dtype(x.dtype)
    itemsize = stream_dtype.itemsize

    # --- TD: local layers fused per grid step (MXU-sized, lane-dense) --------
    td = _pick_td(d, m1, m2, itemsize)
    nblk = d // td
    K = td * m1           # contraction dim of the block-diagonal matmul
    N2 = td * m2          # output lane dim per step

    # --- one-time wrapper-side prep (amortized over all batch rows) ----------
    # Block-diagonal weight: W_bd[i, t*m1 + k, s*m2 + m] = weight[i*td+t, k, m] * (t==s)
    w_blocks = weight.reshape(nblk, td, m1, m2)
    eye = jnp.eye(td, dtype=weight.dtype)
    w_bd = jnp.einsum("btkm,ts->btksm", w_blocks, eye).reshape(nblk, K, N2)
    b_rows = bias.reshape(nblk, 1, N2)
    x2 = x.reshape(n, d * m1)          # free contiguous reshape (lane-dense)

    if compute_dtype is not None:
        x2 = x2.astype(stream_dtype)
        w_bd = w_bd.astype(stream_dtype)
        b_rows = b_rows.astype(stream_dtype)

    # --- TN: batch rows per grid step, PADDED-aware VMEM budget ---------------
    # Count x + out blocks (lane-padded) x2 for double buffering, plus the
    # double-buffered weight/bias blocks; keep total <= ~24 MiB so it fits the
    # 32 MiB scoped limit everywhere and well inside v7x's 64 MiB VMEM.
    k_pad = _round_up(K, 128)
    n2_pad = _round_up(N2, 128)
    out_itemsize = jnp.dtype(out_dtype).itemsize
    budget = 24 * 1024 * 1024
    w_bytes = 2 * _round_up(K, 8) * n2_pad * itemsize + 2 * 8 * n2_pad * itemsize
    per_row = 2 * (k_pad * itemsize + n2_pad * out_itemsize)
    tn_cap = max(8, (budget - w_bytes) // per_row)
    tn = _pick_tile(n, cap=tn_cap, multiple=8)

    # d-blocks outer (PARALLEL -> megacore shards disjoint weights per TC),
    # n-blocks inner (weight/bias index maps ignore it -> fetched once).
    grid = (nblk, n // tn)

    cost = pl.CostEstimate(
        flops=2 * n * nblk * K * N2,
        transcendentals=0,
        bytes_accessed=(itemsize * (n * d * m1 + nblk * K * N2 + d * m2)
                        + out_itemsize * n * d * m2),
    )

    out2 = pl.pallas_call(
        _locally_connected_kernel,
        out_shape=jax.ShapeDtypeStruct((n, d * m2), out_dtype),
        grid_spec=pltpu.PrefetchScalarGridSpec(
            num_scalar_prefetch=0,
            grid=grid,
            in_specs=[
                # x: lane-dense (TN, TD*m1) window of [n, d*m1].
                pl.BlockSpec((tn, K), lambda i, j: (j, i)),
                # block-diag weight: (1, TD*m1, TD*m2); independent of inner j.
                pl.BlockSpec((1, K, N2), lambda i, j: (i, 0, 0)),
                # bias row: (1, 1, TD*m2); independent of inner j.
                pl.BlockSpec((1, 1, N2), lambda i, j: (i, 0, 0)),
            ],
            # lane-dense output tile -> unmasked full-lane stores.
            out_specs=pl.BlockSpec((tn, N2), lambda i, j: (j, i)),
        ),
        compiler_params=pltpu.CompilerParams(
            dimension_semantics=("parallel", "arbitrary"),
            vmem_limit_bytes=32 * 1024 * 1024,
        ),
        cost_estimate=cost,
    )(x2, w_bd, b_rows)

    return out2.reshape(n, d, m2)


def init_params(key, num_linear, input_features, output_features, dtype=jnp.float32):
    """Uniform(-sqrt(1/m1), sqrt(1/m1)) init, matching reset_parameters()."""
    bound = (1.0 / input_features) ** 0.5
    kw, kb = jax.random.split(key)
    weight = jax.random.uniform(
        kw, (num_linear, input_features, output_features),
        minval=-bound, maxval=bound, dtype=dtype)
    bias = jax.random.uniform(
        kb, (num_linear, output_features),
        minval=-bound, maxval=bound, dtype=dtype)
    return weight, bias


if __name__ == "__main__":
    key = jax.random.PRNGKey(0)
    k_x, k_p = jax.random.split(key)

    # Small shapes consistent with the module: n=batch, d=num_linear, m1 -> m2.
    n, d, m1, m2 = 16, 64, 16, 8

    x = jax.random.normal(k_x, (n, d, m1), dtype=jnp.float32)
    weight, bias = init_params(k_p, d, m1, m2)

    out = jax.jit(locally_connected)(x, weight, bias)
    out = jax.block_until_ready(out)

    # Pure-JAX reference: same math as
    # torch.matmul(input.unsqueeze(2), W.unsqueeze(0)).squeeze(2) + b.
    ref = jnp.einsum("ndk,dko->ndo", x, weight) + bias[None, :, :]
    assert out.shape == (n, d, m2)
    assert jnp.allclose(out, ref, atol=1e-5, rtol=1e-5)

    print("KERNEL_OK")
</pallas_src>

<mosaic_0001>
module attributes {stable_mosaic.version = 11 : i64} {
  func.func @_locally_connected_kernel(%arg0: i32, %arg1: i32, %arg2: memref<16x256xf32, #tpu.memory_space<vmem>>, %arg3: memref<1x256x128xf32, #tpu.memory_space<vmem>>, %arg4: memref<1x1x128xf32, #tpu.memory_space<vmem>>, %arg5: memref<16x128xf32, #tpu.memory_space<vmem>>) attributes {dimension_semantics = [#tpu.dimension_semantics<parallel>, #tpu.dimension_semantics<arbitrary>], iteration_bounds = array<i64: 4, 1>, scalar_prefetch = 0 : i64, scratch_operands = 0 : i64, tpu.core_type = #tpu.core_type<tc>, window_params = [{transform_indices = @transform_0, window_bounds = array<i64: 16, 256>}, {transform_indices = @transform_1, window_bounds = array<i64: 1, 256, 128>}, {transform_indices = @transform_2, window_bounds = array<i64: 1, 1, 128>}, {transform_indices = @transform_3, window_bounds = array<i64: 16, 128>}]} {
    %c0 = arith.constant 0 : index
    %c0_0 = arith.constant 0 : index
    %0 = vector.load %arg2[%c0, %c0_0] : memref<16x256xf32, #tpu.memory_space<vmem>>, vector<16x256xf32>
    %c0_1 = arith.constant 0 : index
    %c0_2 = arith.constant 0 : index
    %c0_3 = arith.constant 0 : index
    %1 = vector.load %arg3[%c0_1, %c0_2, %c0_3] : memref<1x256x128xf32, #tpu.memory_space<vmem>>, vector<1x256x128xf32>
    %2 = vector.shape_cast %1 : vector<1x256x128xf32> to vector<256x128xf32>
    %cst = arith.constant dense<0.000000e+00> : vector<16x128xf32>
    %3 = tpu.matmul %0, %2, %cst {dimension_numbers = #tpu.dot_dimension_numbers<[1], [0], [0], [1], [0, 0, 1, 1], [], []>} : vector<16x256xf32>, vector<256x128xf32>, vector<16x128xf32> -> vector<16x128xf32>
    %c0_4 = arith.constant 0 : index
    %c0_5 = arith.constant 0 : index
    %c0_6 = arith.constant 0 : index
    %4 = vector.load %arg4[%c0_4, %c0_5, %c0_6] : memref<1x1x128xf32, #tpu.memory_space<vmem>>, vector<1x1x128xf32>
    %5 = vector.shape_cast %4 : vector<1x1x128xf32> to vector<1x128xf32>
    %6 = vector.broadcast %5 : vector<1x128xf32> to vector<16x128xf32>
    %7 = arith.addf %3, %6 : vector<16x128xf32>
    %c0_7 = arith.constant 0 : index
    %c0_8 = arith.constant 0 : index
    %8 = vector.load %arg5[%c0_7, %c0_8] : memref<16x128xf32, #tpu.memory_space<vmem>>, vector<16x128xf32>
    tpu.vector_store %arg5[%c0_7, %c0_8], %7 {strides = array<i32>} : memref<16x128xf32, #tpu.memory_space<vmem>>, vector<16x128xf32>,
    return
  }
  func.func @transform_0(%arg0: i32, %arg1: i32) -> (i32, i32) {
    %c0_i32 = arith.constant 0 : i32
    return %arg1, %arg0 : i32, i32
  }
  func.func @transform_1(%arg0: i32, %arg1: i32) -> (i32, i32, i32) {
    %c0_i32 = arith.constant 0 : i32
    %c0_i32_0 = arith.constant 0 : i32
    %c0_i32_1 = arith.constant 0 : i32
    return %arg0, %c0_i32, %c0_i32_0 : i32, i32, i32
  }
  func.func @transform_2(%arg0: i32, %arg1: i32) -> (i32, i32, i32) {
    %c0_i32 = arith.constant 0 : i32
    %c0_i32_0 = arith.constant 0 : i32
    %c0_i32_1 = arith.constant 0 : i32
    return %arg0, %c0_i32, %c0_i32_0 : i32, i32, i32
  }
  func.func @transform_3(%arg0: i32, %arg1: i32) -> (i32, i32) {
    %c0_i32 = arith.constant 0 : i32
    return %arg1, %arg0 : i32, i32
  }
}

</mosaic_0001>

<bundles_post_ra>
// kernel: locally_connected.1
= control target key start
LH: loop header
LB: loop body
LE: loop exit
PB: predicated region body
PF: predicated region fallthrough
CT: control target
= control target key end

     0   :  { %s626_s12 = smov 0   ;;  %s628_s13 = smov 0   ;;  %s753_s0 = inlined_call_operand.vmem [shape: f32[16,1024], index: 0, kind: input, shape index: {}]   ;;  %s754_s1 = inlined_call_operand.vmem [shape: f32[4,256,128], index: 1, kind: input, shape index: {}]   ;;  %s755_s2 = inlined_call_operand.vmem [shape: f32[4,1,128], index: 2, kind: input, shape index: {}]   ;;  %s756_s3 = inlined_call_operand.vmem [shape: f32[16,512], index: 3, kind: output, shape index: {}]  }
   0x1   :  { %s630_s14 = smov 0   ;;  %s632_s15 = smov 0  }
   0x2   :  { %s634_s16 = smov 0  }
   0x3 LB: > { %s25_s17 = sadd.s32 1, %s600_s15  ;;  %s475_s18 = sadd.s32 4294967295, %s604_s16   ;;  %s604_s16 = sphi %s634_s16, %s13_s16   ;;  %s600_s15 = sphi %s632_s15, %s761_s15   ;;  %s596_s14 = sphi %s630_s14, %s760_s14   ;;  %s592_s13 = sphi %s628_s13, %s759_s13   ;;  %s588_s12 = sphi %s626_s12, %s758_s12  }
   0x4   : > { %p27_p0 = scmp.ge.s32.totalorder %s25_s17, 4  ;;  %p41_p1 = scmp.ne.s32.totalorder %s592_s13, %s588_s12 }
   0x5   : > { %p42_p2 = scmp.eq.s32.totalorder %s604_s16, 0  ;;  %p125_p4 = scmp.eq.s32.totalorder %s475_s18, 3 }
   0x6   : > { %s763_s17 = smov (%p27_p0, %s25_s17), 0  ;;  %s34_s20 = sadd.s32 1, %s592_s13 }
   0x7   : > { %p43_p3 = por %p42_p2, %p41_p1  ;;  %s30_s19 = ssub.s32 %s600_s15, %s763_s17 }
   0x8   : > { %p32_p5 = scmp.eq.s32.totalorder %s30_s19, 0  ;;  %p661_p6 = por %p125_p4, %p41_p1 }
   0x9   : > { %p478_p7 = scmp.ge.s32.totalorder %s604_s16, 4 }
   0xa   : > { %s666_s22 = scalar_select %p32_p5, %s592_s13, %s34_s20  }
   0xb   : > { %147 = sbr.rel (%p478_p7) target bundleno = 24 (0x18), region = 16 }
  0x10   : > { %150 = sbr.rel (!%p43_p3) target bundleno = 24 (0x18), region = 20  ;;  %s152_s23 = sand.u32 (%p43_p3), 1, %s592_s13  }
  0x11   : > { %s491_s24 = sshll.u32 (%p43_p3), %s600_s15, 4  ;;  %s479_s25 = sshll.u32 (%p43_p3), %s152_s23, 5 }
  0x12   : > { %s160_s28 = scalar_lea.vmem (%p43_p3), %s753_s0, %s491_s24  ;;  %s154_s29 = scalar_lea.vmem (%p43_p3), [#allocation2], %s479_s25 }
  0x13   : > { %v173_v0 = vld [vmem:[%s160_s28] sm:$0xff] (%p43_p3)  ;;  %v175_v1 = vld [vmem:[%s160_s28 + $0x8] sm:$0xff] (%p43_p3) }
  0x14   : > { %v177_v2 = vld [vmem:[%s160_s28 + $0x40] sm:$0xff] (%p43_p3)  ;;  %174 = vst [vmem:[%s154_s29] sm:$0xff] (%p43_p3), %v173_v0  ;;  %v179_v3 = vld [vmem:[%s160_s28 + $0x48] sm:$0xff] (%p43_p3) }
  0x15   : > { %176 = vst [vmem:[%s154_s29 + $0x8] sm:$0xff] %v175_v1 }
  0x16   : > { %178 = vst [vmem:[%s154_s29 + $0x10] sm:$0xff] %v177_v2 }
  0x17   : > { %180 = vst [vmem:[%s154_s29 + $0x18] sm:$0xff] %v179_v3 }
  0x18 PF: > { %p482_p8 = scmp.ge.s32.totalorder %s604_s16, 1  ;;  %p199_p9 = scmp.lt.s32.totalorder %s604_s16, 5 }
  0x1a   : > { %p200_p10 = pnand %p482_p8, %p199_p9 }
  0x1b   : > { %p238_p11 = scmp.lt.s32.totalorder (!%p200_p10), %s596_s14, 3  ;;  %s206_s11 = sand.u32 (!%p200_p10), 1, %s588_s12  }
  0x1c   : > { %203 = sbr.rel (%p200_p10) target bundleno = 214 (0xd6), region = 51  ;;  %s483_s18 = sshll.u32 (!%p200_p10), %s206_s11, 5 }
  0x1d   : > { %s208_s19 = scalar_lea.vmem (!%p200_p10), [#allocation2], %s483_s18  ;;  %s484_s24 = sshll.u32 (!%p200_p10), %s206_s11, 4 }
  0x1e   : > { %s235_s25 = scalar_lea.vmem (!%p200_p10), [#allocation3], %s484_s24 }
  0x21   : > { %s678_s30 = scalar_select %p238_p11, %s596_s14, 3  ;;  %v249_v36 = vld [vmem:[%s208_s19 + $0x10] sm:$0xff]  ;;  %v250_v37 = vld [vmem:[%s208_s19 + $0x18] sm:$0xff]  ;;  %v247_v38 = vld [vmem:[%s208_s19] sm:$0xff] }
  0x22   : > { %v248_v39 = vld [vmem:[%s208_s19 + $0x8] sm:$0xff]  ;;  %s488_s26 = sshll.u32 (%p661_p6), %s596_s14, 3 }
  0x23   : > { %s492_s4 = sshll.u32 %s678_s30, 8  ;;  %s245_s7 = scalar_lea.vmem %s755_s2, %s678_s30 }
  0x24   : > { %s688_s10 = scalar_lea.vmem %s754_s1, %s492_s4  ;;  %v565_v40 = vld [vmem:[%s245_s7] ss:$0 sm:$0xff]  ;;  %s346_s28 = scalar_lea.vmem (%p661_p6), %s756_s3, %s488_s26 }
  0x25   : > { %v266_v4 = vld [vmem:[%s688_s10 + $0x78] sm:$0xff]  ;;  %v265_v5 = vld [vmem:[%s688_s10 + $0x70] sm:$0xff]  ;;  %v264_v8 = vld [vmem:[%s688_s10 + $0x68] sm:$0xff] }
  0x26   : > { %v282_v6 = vld [vmem:[%s688_s10 + $0xf8] sm:$0xff]  ;;  %493 = vmatpush.msra.mxu2 %v266_v4  ;;  %v281_v7 = vld [vmem:[%s688_s10 + $0xf0] sm:$0xff]  ;;  %287 = vmatpush.msra.mxu0 %v266_v4  ;;  %v280_v9 = vld [vmem:[%s688_s10 + $0xe8] sm:$0xff] }
  0x27   : > { %509 = vmatpush.msra.mxu3 %v282_v6  ;;  %310 = vmatpush.msra.mxu1 %v282_v6  ;;  %v263_v10 = vld [vmem:[%s688_s10 + $0x60] sm:$0xff]  ;;  %v262_v12 = vld [vmem:[%s688_s10 + $0x58] sm:$0xff]  ;;  %v261_v14 = vld [vmem:[%s688_s10 + $0x50] sm:$0xff] }
  0x28   : > { %494 = vmatpush.msra.mxu2 %v265_v5  ;;  %288 = vmatpush.msra.mxu0 %v265_v5  ;;  %v279_v11 = vld [vmem:[%s688_s10 + $0xe0] sm:$0xff]  ;;  %v278_v13 = vld [vmem:[%s688_s10 + $0xd8] sm:$0xff]  ;;  %v277_v15 = vld [vmem:[%s688_s10 + $0xd0] sm:$0xff] }
  0x29   : > { %510 = vmatpush.msra.mxu3 %v281_v7  ;;  %311 = vmatpush.msra.mxu1 %v281_v7  ;;  %v260_v16 = vld [vmem:[%s688_s10 + $0x48] sm:$0xff]  ;;  %v259_v18 = vld [vmem:[%s688_s10 + $0x40] sm:$0xff]  ;;  %v258_v20 = vld [vmem:[%s688_s10 + $0x38] sm:$0xff] }
  0x2a   : > { %495 = vmatpush.msra.mxu2 %v264_v8  ;;  %289 = vmatpush.msra.mxu0 %v264_v8  ;;  %v276_v17 = vld [vmem:[%s688_s10 + $0xc8] sm:$0xff]  ;;  %v275_v19 = vld [vmem:[%s688_s10 + $0xc0] sm:$0xff]  ;;  %v274_v21 = vld [vmem:[%s688_s10 + $0xb8] sm:$0xff] }
  0x2b   : > { %511 = vmatpush.msra.mxu3 %v280_v9  ;;  %312 = vmatpush.msra.mxu1 %v280_v9  ;;  %v257_v22 = vld [vmem:[%s688_s10 + $0x30] sm:$0xff]  ;;  %v256_v24 = vld [vmem:[%s688_s10 + $0x28] sm:$0xff]  ;;  %v255_v26 = vld [vmem:[%s688_s10 + $0x20] sm:$0xff] }
  0x2c   : > { %496 = vmatpush.msra.mxu2 %v263_v10  ;;  %290 = vmatpush.msra.mxu0 %v263_v10  ;;  %v273_v23 = vld [vmem:[%s688_s10 + $0xb0] sm:$0xff]  ;;  %v272_v25 = vld [vmem:[%s688_s10 + $0xa8] sm:$0xff]  ;;  %v271_v27 = vld [vmem:[%s688_s10 + $0xa0] sm:$0xff] }
  0x2d   : > { %512 = vmatpush.msra.mxu3 %v279_v11  ;;  %313 = vmatpush.msra.mxu1 %v279_v11  ;;  %v254_v28 = vld [vmem:[%s688_s10 + $0x18] sm:$0xff]  ;;  %v253_v30 = vld [vmem:[%s688_s10 + $0x10] sm:$0xff]  ;;  %v252_v32 = vld [vmem:[%s688_s10 + $0x8] sm:$0xff] }
  0x2e   : > { %497 = vmatpush.msra.mxu2 %v262_v12  ;;  %291 = vmatpush.msra.mxu0 %v262_v12  ;;  %v270_v29 = vld [vmem:[%s688_s10 + $0x98] sm:$0xff]  ;;  %v269_v31 = vld [vmem:[%s688_s10 + $0x90] sm:$0xff]  ;;  %v268_v33 = vld [vmem:[%s688_s10 + $0x88] sm:$0xff] }
  0x2f   : > { %513 = vmatpush.msra.mxu3 %v278_v13  ;;  %314 = vmatpush.msra.mxu1 %v278_v13  ;;  %v251_v34 = vld [vmem:[%s688_s10] sm:$0xff] }
  0x30   : > { %498 = vmatpush.msra.mxu2 %v261_v14  ;;  %292 = vmatpush.msra.mxu0 %v261_v14  ;;  %v267_v35 = vld [vmem:[%s688_s10 + $0x80] sm:$0xff] }
  0x31   : > { %514 = vmatpush.msra.mxu3 %v277_v15  ;;  %315 = vmatpush.msra.mxu1 %v277_v15 }
  0x32   : > { %499 = vmatpush.msra.mxu2 %v260_v16  ;;  %293 = vmatpush.msra.mxu0 %v260_v16 }
  0x33   : > { %515 = vmatpush.msra.mxu3 %v276_v17  ;;  %316 = vmatpush.msra.mxu1 %v276_v17 }
  0x34   : > { %500 = vmatpush.msra.mxu2 %v259_v18  ;;  %294 = vmatpush.msra.mxu0 %v259_v18 }
  0x35   : > { %516 = vmatpush.msra.mxu3 %v275_v19  ;;  %317 = vmatpush.msra.mxu1 %v275_v19 }
  0x36   : > { %501 = vmatpush.msra.mxu2 %v258_v20  ;;  %295 = vmatpush.msra.mxu0 %v258_v20 }
  0x37   : > { %517 = vmatpush.msra.mxu3 %v274_v21  ;;  %318 = vmatpush.msra.mxu1 %v274_v21 }
  0x38   : > { %502 = vmatpush.msra.mxu2 %v257_v22  ;;  %296 = vmatpush.msra.mxu0 %v257_v22 }
  0x39   : > { %518 = vmatpush.msra.mxu3 %v273_v23  ;;  %319 = vmatpush.msra.mxu1 %v273_v23 }
  0x3a   : > { %503 = vmatpush.msra.mxu2 %v256_v24  ;;  %297 = vmatpush.msra.mxu0 %v256_v24 }
  0x3b   : > { %519 = vmatpush.msra.mxu3 %v272_v25  ;;  %320 = vmatpush.msra.mxu1 %v272_v25 }
  0x3c   : > { %504 = vmatpush.msra.mxu2 %v255_v26  ;;  %298 = vmatpush.msra.mxu0 %v255_v26 }
  0x3d   : > { %520 = vmatpush.msra.mxu3 %v271_v27  ;;  %321 = vmatpush.msra.mxu1 %v271_v27 }
  0x3e   : > { %505 = vmatpush.msra.mxu2 %v254_v28  ;;  %299 = vmatpush.msra.mxu0 %v254_v28 }
  0x3f   : > { %521 = vmatpush.msra.mxu3 %v270_v29  ;;  %322 = vmatpush.msra.mxu1 %v270_v29 }
  0x40   : > { %506 = vmatpush.msra.mxu2 %v253_v30  ;;  %300 = vmatpush.msra.mxu0 %v253_v30 }
  0x41   : > { %522 = vmatpush.msra.mxu3 %v269_v31  ;;  %323 = vmatpush.msra.mxu1 %v269_v31 }
  0x42   : > { %507 = vmatpush.msra.mxu2 %v252_v32  ;;  %301 = vmatpush.msra.mxu0 %v252_v32 }
  0x43   : > { %523 = vmatpush.msra.mxu3 %v268_v33  ;;  %324 = vmatpush.msra.mxu1 %v268_v33 }
  0x44   : > { %508 = vmatpush.msra.mxu2 %v251_v34  ;;  %302 = vmatpush.msra.mxu0 %v251_v34 }
  0x45   : > { %524 = vmatpush.msra.mxu3 %v267_v35  ;;  %306 = vmatmul.f32.vlgmr.msra.gmra.mxu2 %v249_v36 }
  0x46   : > { %329 = vmatmul.f32.vlgmr.msra.gmra.mxu3 %v250_v37  ;;  %325 = vmatpush.msra.mxu1 %v267_v35 }
  0x47   : > { %303 = vmatmul.f32.vlgmr.msra.gmra.mxu0 %v247_v38  ;;  %326 = vmatmul.f32.vlgmr.msra.gmra.mxu1 %v248_v39 }
  0xc4   : > { %v304_v41 = vpop.f32.mrf.mxu0  ;;  %v327_v42 = vpop.f32.mrf.mxu1 }
  0xc5   : > { %v305_v43 = vadd.f32 %v565_v40, %v304_v41 }
  0xc7   : > { %v328_v44 = vadd.f32 %v327_v42, %v305_v43 }
  0xc8   : > { %v307_v45 = vpop.f32.mrf.mxu2 }
  0xc9   : > { %v330_v46 = vpop.f32.mrf.mxu3  ;;  %v308_v47 = vadd.f32 %v565_v40, %v307_v45  ;;  %333 = vst [vmem:[%s235_s25] sm:$0xff] %v328_v44  ;;  %341 = sbr.rel (!%p661_p6) target bundleno = 214 (0xd6), region = 59 }
  0xcb   : > { %v331_v48 = vadd.f32 %v330_v46, %v308_v47 }
  0xcd   : > { %334 = vst [vmem:[%s235_s25 + $0x8] sm:$0xff] %v331_v48 }
  0xd0   : > { %v377_v49 = vld [vmem:[%s235_s25] sm:$0xff] }
  0xd1   : > { %378 = vst [vmem:[%s346_s28] sm:$0xff] %v377_v49 }
  0xd4   : > { %v379_v50 = vld [vmem:[%s235_s25 + $0x8] sm:$0xff] }
  0xd5   : > { %380 = vst [vmem:[%s346_s28 + $0x20] sm:$0xff] %v379_v50 }
  0xd6 PF: > { %s13_s16 = sadd.s32 1, %s604_s16   ;;  %s758_s12 = smov %s592_s13 }
  0xd7   : > { %p10_p12 = scmp.ge.s32.totalorder %s13_s16, 6   ;;  %s759_s13 = smov %s666_s22 }
  0xd8   : > { %s760_s14 = smov %s600_s15  ;;  %s761_s15 = smov %s763_s17 }
  0xd9   :  { %12 = sbr.rel (!%p10_p12) target bundleno = 3 (0x3), region = 134 }

</bundles_post_ra>
